<compile_context>
chip_gen: v6e
topology: v6e:2x2x1
jax: 0.10.0
libtpu: 0.0.40
codegen_flags: <defaults>
</compile_context>

<pallas_src>
import functools

import jax
import jax.numpy as jnp
from jax.experimental import pallas as pl
from jax.experimental.pallas import tpu as pltpu


def _apply_activation(name, y):
    if name == "relu":
        return jnp.maximum(y, 0.0)
    if name == "tanh":
        return jnp.tanh(y)
    if name == "identity":
        return y
    raise ValueError(f"unknown activation {name}")


def _fused_mlp_kernel(x_ref, *refs, activations):
    """Fused MLP: x -> [dot(W_l) + b_l -> act_l] for every layer, one kernel.

    refs = (w0, b0, w1, b1, ..., w_{L-1}, b_{L-1}, o_ref).
    Weights are bf16 (In, Out) (already transposed from PyTorch (Out, In)),
    biases are f32 (1, Out).  MXU runs bf16 x bf16 -> f32; all elementwise
    math stays f32.  Intermediates stay in VMEM/vregs — no HBM traffic
    between layers; only the final (lane-dense) activation slab is stored.
    """
    o_ref = refs[-1]
    n_layers = (len(refs) - 1) // 2
    h = x_ref[...]
    for l in range(n_layers):            # static unroll — shapes are compile-time
        w = refs[2 * l][...]              # bf16 (In, Out)
        b = refs[2 * l + 1][...]          # f32  (1, Out)
        y = jnp.dot(h.astype(w.dtype), w, preferred_element_type=jnp.float32) + b
        h = _apply_activation(activations[l], y)
    o_ref[...] = h.astype(o_ref.dtype)


def mlp_forward(x, params, *, activations, out_dim,
                max_batch_tile=2048, gridless_batch=256):
    """Run the whole MLP in a single fused Pallas kernel.

    x: (B, In) float32.  params: list of (w bf16 (In,Out), b f32 (1,Out)),
    with the final layer's Out padded to a multiple of 128 (lane-dense slab).
    """
    B, In = x.shape
    out_padded = params[-1][0].shape[1]

    flat = []
    for w, b in params:
        flat.extend([w, b])

    kernel = functools.partial(_fused_mlp_kernel, activations=tuple(activations))

    # Advisory cost estimate so XLA schedules this call sensibly in the RL loop.
    flops = 2 * B * sum(int(w.shape[0]) * int(w.shape[1]) for w, _ in params)
    transcendentals = B * sum(
        int(w.shape[1]) for (w, _), a in zip(params, activations) if a == "tanh")
    bytes_accessed = (
        x.size * x.dtype.itemsize
        + sum(w.size * w.dtype.itemsize + b.size * b.dtype.itemsize for w, b in params)
        + B * out_padded * x.dtype.itemsize)
    cost = pl.CostEstimate(flops=flops, transcendentals=transcendentals,
                           bytes_accessed=bytes_accessed)

    if B <= gridless_batch:
        # Small-batch / inference path: gridless call, whole arrays in VMEM,
        # no grid bookkeeping, no double buffers for inputs read once.
        out = pl.pallas_call(
            kernel,
            out_shape=jax.ShapeDtypeStruct((B, out_padded), x.dtype),
            cost_estimate=cost,
        )(x, *flat)
    else:
        # Training-sized batches: tile the batch axis.  Keep >= 2 grid steps so
        # the "parallel" axis can shard across v7x's 2 TensorCores; tile is a
        # multiple of 8 sublanes and capped so per-step VMEM (x + out slabs,
        # double-buffered, + resident weights) stays far under v7x's 64 MiB.
        half = -(-B // 2)                                  # cdiv(B, 2)
        tb = min(max_batch_tile, ((half + 7) // 8) * 8)    # round up to 8
        grid = pl.cdiv(B, tb)                              # ragged tail is masked

        in_specs = [pl.BlockSpec((tb, In), lambda i: (i, 0))]
        for w, b in params:
            # Constant index_map -> weights/bias stay VMEM-resident across the grid.
            # TODO(synk): for much wider layers add pipeline_mode=pl.Buffered(1) on
            # these resident specs and set vmem_limit_bytes explicitly for v7x (64 MiB).
            in_specs.append(pl.BlockSpec(w.shape, lambda i: (0, 0)))
            in_specs.append(pl.BlockSpec(b.shape, lambda i: (0, 0)))

        out = pl.pallas_call(
            kernel,
            out_shape=jax.ShapeDtypeStruct((B, out_padded), x.dtype),
            grid=(grid,),
            in_specs=in_specs,
            out_specs=pl.BlockSpec((tb, out_padded), lambda i: (i, 0)),
            compiler_params=pltpu.CompilerParams(
                dimension_semantics=("parallel",)),
            cost_estimate=cost,
        )(x, *flat)

    if out_padded != out_dim:
        out = out[:, :out_dim]
    return out


class NetworkFactoryPallas:
    """JAX/Pallas equivalent of protorl NetworkFactory (an MLP)."""

    def __init__(self, input_dims, hidden_layer_dims, activations, key):
        # Mirror PyTorch: for dim in hidden_layer_dims: Linear(*c_dim, dim)
        self.activations = tuple(activations)
        self.out_dim = int(hidden_layer_dims[-1])
        self.params = []
        c_dim = list(input_dims)
        n_layers = len(hidden_layer_dims)
        for li, dim in enumerate(hidden_layer_dims):
            fan_in = c_dim[0]
            key, kw, kb = jax.random.split(key, 3)
            # PyTorch nn.Linear default init: U(-1/sqrt(fan_in), 1/sqrt(fan_in))
            bound = 1.0 / float(fan_in) ** 0.5
            w = jax.random.uniform(kw, (dim, fan_in), jnp.float32, -bound, bound)
            b = jax.random.uniform(kb, (dim,), jnp.float32, -bound, bound)
            wt = w.T                       # (In, Out) — no in-kernel transpose
            bt = b.reshape(1, -1)          # (1, Out)
            if li == n_layers - 1:
                # Lane-dense output: zero-pad the final Out dim to a multiple of 128
                # so the kernel writes unmasked full-lane stores; wrapper slices back.
                out_padded = ((dim + 127) // 128) * 128
                if out_padded != dim:
                    wt = jnp.pad(wt, ((0, 0), (0, out_padded - dim)))
                    bt = jnp.pad(bt, ((0, 0), (0, out_padded - dim)))
            # bf16 weights (MXU-native), f32 bias (added to the f32 accumulator).
            self.params.append((wt.astype(jnp.bfloat16), bt.astype(jnp.float32)))
            c_dim = [dim]
        # jit the WHOLE forward (single dispatch, activations/out_dim static).
        self._forward = jax.jit(functools.partial(
            mlp_forward, activations=self.activations, out_dim=self.out_dim))

    def __call__(self, x):
        return self._forward(x, self.params)


if __name__ == "__main__":
    key = jax.random.PRNGKey(0)
    k_in, k_net, k_big = jax.random.split(key, 3)

    # Small shapes consistent with the module: vector observations -> MLP.
    batch = 8
    input_dims = [32]
    hidden_layer_dims = [64, 64, 16]
    activations = ["relu", "relu", "tanh"]

    net = NetworkFactoryPallas(input_dims, hidden_layer_dims, activations, k_net)

    def ref_forward(x):
        # f32 reference (kernel uses bf16 matmul operands -> loosened tolerance).
        h = x
        for idx, (w, b) in enumerate(net.params):
            h = _apply_activation(net.activations[idx],
                                  h @ w.astype(jnp.float32) + b)
        return h[:, :net.out_dim]

    # Small-batch (gridless fused) path.
    x = jax.random.normal(k_in, (batch, input_dims[0]), jnp.float32)
    out = jax.block_until_ready(net(x))
    assert out.shape == (batch, hidden_layer_dims[-1])
    assert jnp.allclose(out, ref_forward(x), atol=2e-2, rtol=2e-2)

    # Larger, non-multiple-of-tile batch exercises the tiled "parallel" path
    # (2 grid steps, ragged masked tail block, lane-dense output slab).
    big_batch = 260
    xb = jax.random.normal(k_big, (big_batch, input_dims[0]), jnp.float32)
    outb = jax.block_until_ready(net(xb))
    assert outb.shape == (big_batch, hidden_layer_dims[-1])
    assert jnp.allclose(outb, ref_forward(xb), atol=2e-2, rtol=2e-2)

    print("KERNEL_OK")
</pallas_src>

<mosaic_0001>
module attributes {stable_mosaic.version = 11 : i64} {
  func.func @_fused_mlp_kernel(%arg0: memref<8x32xf32, #tpu.memory_space<vmem>>, %arg1: memref<32x64xbf16, #tpu.memory_space<vmem>>, %arg2: memref<1x64xf32, #tpu.memory_space<vmem>>, %arg3: memref<64x64xbf16, #tpu.memory_space<vmem>>, %arg4: memref<1x64xf32, #tpu.memory_space<vmem>>, %arg5: memref<64x128xbf16, #tpu.memory_space<vmem>>, %arg6: memref<1x128xf32, #tpu.memory_space<vmem>>, %arg7: memref<8x128xf32, #tpu.memory_space<vmem>>) attributes {dimension_semantics = [], scalar_prefetch = 0 : i64, scratch_operands = 0 : i64, tpu.core_type = #tpu.core_type<tc>} {
    %c0 = arith.constant 0 : index
    %c0_0 = arith.constant 0 : index
    %0 = vector.load %arg0[%c0, %c0_0] : memref<8x32xf32, #tpu.memory_space<vmem>>, vector<8x32xf32>
    %c0_1 = arith.constant 0 : index
    %c0_2 = arith.constant 0 : index
    %1 = vector.load %arg1[%c0_1, %c0_2] : memref<32x64xbf16, #tpu.memory_space<vmem>>, vector<32x64xbf16>
    %c0_3 = arith.constant 0 : index
    %c0_4 = arith.constant 0 : index
    %2 = vector.load %arg2[%c0_3, %c0_4] : memref<1x64xf32, #tpu.memory_space<vmem>>, vector<1x64xf32>
    %3 = arith.truncf %0 : vector<8x32xf32> to vector<8x32xbf16>
    %cst = arith.constant dense<0.000000e+00> : vector<8x64xf32>
    %4 = tpu.matmul %3, %1, %cst {dimension_numbers = #tpu.dot_dimension_numbers<[1], [0], [0], [1], [0, 0, 1, 1], [], []>} : vector<8x32xbf16>, vector<32x64xbf16>, vector<8x64xf32> -> vector<8x64xf32>
    %5 = vector.broadcast %2 : vector<1x64xf32> to vector<8x64xf32>
    %6 = arith.addf %4, %5 : vector<8x64xf32>
    %cst_5 = arith.constant 0.000000e+00 : f32
    %7 = vector.broadcast %cst_5 : f32 to vector<8x64xf32>
    %8 = arith.maximumf %6, %7 : vector<8x64xf32>
    %c0_6 = arith.constant 0 : index
    %c0_7 = arith.constant 0 : index
    %9 = vector.load %arg3[%c0_6, %c0_7] : memref<64x64xbf16, #tpu.memory_space<vmem>>, vector<64x64xbf16>
    %c0_8 = arith.constant 0 : index
    %c0_9 = arith.constant 0 : index
    %10 = vector.load %arg4[%c0_8, %c0_9] : memref<1x64xf32, #tpu.memory_space<vmem>>, vector<1x64xf32>
    %11 = arith.truncf %8 : vector<8x64xf32> to vector<8x64xbf16>
    %cst_10 = arith.constant dense<0.000000e+00> : vector<8x64xf32>
    %12 = tpu.matmul %11, %9, %cst_10 {dimension_numbers = #tpu.dot_dimension_numbers<[1], [0], [0], [1], [0, 0, 1, 1], [], []>} : vector<8x64xbf16>, vector<64x64xbf16>, vector<8x64xf32> -> vector<8x64xf32>
    %13 = vector.broadcast %10 : vector<1x64xf32> to vector<8x64xf32>
    %14 = arith.addf %12, %13 : vector<8x64xf32>
    %cst_11 = arith.constant 0.000000e+00 : f32
    %15 = vector.broadcast %cst_11 : f32 to vector<8x64xf32>
    %16 = arith.maximumf %14, %15 : vector<8x64xf32>
    %c0_12 = arith.constant 0 : index
    %c0_13 = arith.constant 0 : index
    %17 = vector.load %arg5[%c0_12, %c0_13] : memref<64x128xbf16, #tpu.memory_space<vmem>>, vector<64x128xbf16>
    %c0_14 = arith.constant 0 : index
    %c0_15 = arith.constant 0 : index
    %18 = vector.load %arg6[%c0_14, %c0_15] : memref<1x128xf32, #tpu.memory_space<vmem>>, vector<1x128xf32>
    %19 = arith.truncf %16 : vector<8x64xf32> to vector<8x64xbf16>
    %cst_16 = arith.constant dense<0.000000e+00> : vector<8x128xf32>
    %20 = tpu.matmul %19, %17, %cst_16 {dimension_numbers = #tpu.dot_dimension_numbers<[1], [0], [0], [1], [0, 0, 1, 1], [], []>} : vector<8x64xbf16>, vector<64x128xbf16>, vector<8x128xf32> -> vector<8x128xf32>
    %21 = vector.broadcast %18 : vector<1x128xf32> to vector<8x128xf32>
    %22 = arith.addf %20, %21 : vector<8x128xf32>
    %23 = math.tanh %22 : vector<8x128xf32>
    %c0_17 = arith.constant 0 : index
    %c0_18 = arith.constant 0 : index
    %24 = vector.load %arg7[%c0_17, %c0_18] : memref<8x128xf32, #tpu.memory_space<vmem>>, vector<8x128xf32>
    tpu.vector_store %arg7[%c0_17, %c0_18], %23 {strides = array<i32>} : memref<8x128xf32, #tpu.memory_space<vmem>>, vector<8x128xf32>,
    return
  }
}

</mosaic_0001>

<bundles_post_ra>
// kernel: mlp_forward.1
= control target key start
LH: loop header
LB: loop body
LE: loop exit
PB: predicated region body
PF: predicated region fallthrough
CT: control target
= control target key end

     0   :  { %12 = vsyncpa [#allocation3], 0  ;;  %s615_s0 = inlined_call_operand.hbm [shape: f32[8,32], index: 0, kind: input, shape index: {}]   ;;  %s616_s1 = inlined_call_operand.hbm [shape: bf16[32,64], index: 1, kind: input, shape index: {}]   ;;  %s617_s2 = inlined_call_operand.vmem [shape: f32[1,64], index: 2, kind: input, shape index: {}]   ;;  %s618_s3 = inlined_call_operand.hbm [shape: bf16[64,64], index: 3, kind: input, shape index: {}]   ;;  %s619_s4 = inlined_call_operand.vmem [shape: f32[1,64], index: 4, kind: input, shape index: {}]   ;;  %s620_s5 = inlined_call_operand.hbm [shape: bf16[64,128], index: 5, kind: input, shape index: {}]   ;;  %s621_s6 = inlined_call_operand.vmem [shape: f32[1,128], index: 6, kind: input, shape index: {}]   ;;  %s622_s7 = inlined_call_operand.hbm [shape: f32[8,128], index: 7, kind: output, shape index: {}]  }
   0x1   :  { %13 = vsyncpa [#allocation6], 0 }
   0x2   :  { %14 = vsyncpa [#allocation9], 0 }
   0x3   :  { %15 = vsyncpa [#allocation4], 0  ;;  %s528_s24 = smov [#allocation5]  }
   0x4   :  { %s31_s25 = sshll.u32 %s528_s24, 4  ;;  %s32_s25 = int_to_ptr.vmem [resolvable:$true] %s31_s25 }
   0x5   :  { %s428_s26 = scalar_lea.vmem %s32_s25, 256  ;;  %p433_p1 = scmp.lt.s32.totalorder %s32_s25, %s32_s25 }
   0x6   :  { %p429_p0 = scmp.ne.s32.totalorder %s32_s25, %s428_s26  ;;  %p434_p2 = scmp.lt.s32.totalorder %s428_s26, %s428_s26 }
   0x8   :  { %p435_p3 = por %p434_p2, %p433_p1 }
   0xa   :  { %p436_p4 = pnand %p435_p3, %p429_p0 }
   0xc   :  { %439 = shalt.err (!%p436_p4)
}
   0xd   :  { %s529_s27 = smov 64   ;;  %s530_s28 = smov 4  }
   0xe   :  { %37 = dma.hbm_to_vmem [thread:$0]  %s616_s1, 256, %s32_s25, [#allocation6], %s529_s27, %s529_s27, %s530_s28  }
   0xf   :  { %s531_s8 = smov [#allocation2]   ;;  %s532_s10 = smov [#allocation7]  }
  0x10   :  { %s22_s9 = sshll.u32 %s531_s8, 4  ;;  %s45_s11 = sshll.u32 %s532_s10, 4  ;;  %s23_s9 = int_to_ptr.vmem [resolvable:$true] %s22_s9  ;;  %s46_s11 = int_to_ptr.vmem [resolvable:$true] %s45_s11 }
  0x11   :  { %s448_s12 = scalar_lea.vmem %s23_s9, 128  ;;  %p453_p6 = scmp.lt.s32.totalorder %s23_s9, %s23_s9 }
  0x12   :  { %p449_p5 = scmp.ne.s32.totalorder %s23_s9, %s448_s12  ;;  %p454_p7 = scmp.lt.s32.totalorder %s448_s12, %s448_s12 }
  0x14   :  { %p455_p8 = por %p454_p7, %p453_p6 }
  0x16   :  { %p456_p9 = pnand %p455_p8, %p449_p5 }
  0x18   :  { %459 = shalt.err (!%p456_p9)
}
  0x19   :  { %25 = dma.hbm_to_vmem [thread:$0]  %s615_s0, 128, %s23_s9, [#allocation3]  }
  0x1a   :  { %s468_s15 = scalar_lea.vmem %s46_s11, 512  ;;  %p473_p11 = scmp.lt.s32.totalorder %s46_s11, %s46_s11 }
  0x1b   :  { %p469_p10 = scmp.ne.s32.totalorder %s46_s11, %s468_s15  ;;  %p474_p12 = scmp.lt.s32.totalorder %s468_s15, %s468_s15 }
  0x1d   :  { %p475_p13 = por %p474_p12, %p473_p11 }
  0x1f   :  { %p476_p0 = pnand %p475_p13, %p469_p10 }
  0x21   :  { %479 = shalt.err (!%p476_p0)
}
  0x22   :  { %51 = dma.hbm_to_vmem [thread:$0]  %s618_s3, 512, %s46_s11, [#allocation6], %s529_s27, %s529_s27, %s530_s28  }
  0x23   :  { %s533_s17 = smov [#allocation8]  }
  0x24   :  { %s59_s18 = sshll.u32 %s533_s17, 4  ;;  %s60_s18 = int_to_ptr.vmem [resolvable:$true] %s59_s18 }
  0x25   :  { %s488_s19 = scalar_lea.vmem %s60_s18, 512  ;;  %p493_p2 = scmp.lt.s32.totalorder %s60_s18, %s60_s18 }
  0x26   :  { %p489_p1 = scmp.ne.s32.totalorder %s60_s18, %s488_s19  ;;  %p494_p3 = scmp.lt.s32.totalorder %s488_s19, %s488_s19 }
  0x28   :  { %p495_p4 = por %p494_p3, %p493_p2 }
  0x2a   :  { %p496_p5 = pnand %p495_p4, %p489_p1 }
  0x2c   :  { %499 = shalt.err (!%p496_p5)
}
  0x2d   :  { %65 = dma.hbm_to_vmem [thread:$0]  %s620_s5, 512, %s60_s18, [#allocation9], %s529_s27, %s529_s27, %s530_s28  }
  0x2e   :  { %520 = dma.done.wait [#allocation3], 128  }
  0x2f   :  { %521 = vsyncadd [#allocation3], 4294967168 }
  0x30   :  { %522 = dma.done.wait [#allocation6], 768  }
  0x31   :  { %523 = vsyncadd [#allocation6], 4294966528 }
  0x32   :  { %524 = dma.done.wait [#allocation9], 512  }
  0x33   :  { %525 = vsyncadd [#allocation9], 4294966784  ;;  %v534_v0 = vmov 0.0   ;;  %vm535_vm0 = vmmov 0   ;;  %v408_v1 = vld [vmem:[#allocation5 + $0x8] sm:$0xff]   ;;  %v409_v2 = vld [vmem:[#allocation5] sm:$0xff]  }
  0x34   :  { %367 = vmatprep.subr.bf16.mxu0 %v534_v0  ;;  %371 = vmatprep.mubr.msk.bf16.mxu0 %vm535_vm0, %v534_v0  ;;  %v81_v3 = vld [vmem:[#allocation2] sm:$0xff]  ;;  %v410_v4 = vld [vmem:[#allocation7 + $0x18] sm:$0xff]   ;;  %vm106_vm1 = vcmask 261120   ;;  %v411_v5 = vld [vmem:[#allocation7 + $0x10] sm:$0xff]   ;;  %vm191_vm2 = vcmask 523264  }
  0x35   :  { %375 = vmatprep.subr.bf16.mxu1 %v534_v0  ;;  %383 = vmatprep.mubr.msk.bf16.mxu1 %vm535_vm0, %v534_v0  ;;  %v87_v6 = vpack.c.bf16 %v81_v3, %v81_v3  ;;  %v412_v7 = vld [vmem:[#allocation7 + $0x8] sm:$0xff]   ;;  %v413_v8 = vld [vmem:[#allocation7] sm:$0xff]   ;;  %v414_v9 = vld [vmem:[#allocation8 + $0x18] sm:$0xff]  }
  0x36   :  { %368 = vmatpush3.bf16.msra.mxu0 %v408_v1  ;;  %376 = vmatpush3.bf16.msra.mxu1 %v410_v4  ;;  %v415_v10 = vld [vmem:[#allocation8 + $0x10] sm:$0xff]   ;;  %v338_v11 = vld [vmem:[%s617_s2] ss:$0 sm:$0xff]  ;;  %v417_v20 = vld [vmem:[#allocation8] sm:$0xff]  }
  0x37   :  { %369 = vmatprep.subr.bf16.mxu0 %v534_v0  ;;  %377 = vmatprep.subr.bf16.mxu1 %v534_v0  ;;  %v416_v19 = vld [vmem:[#allocation8 + $0x8] sm:$0xff]  }
  0x38   :  { %v342_v21 = vld [vmem:[%s619_s4] ss:$0 sm:$0xff]  ;;  %s536_s4 = smov [#allocation10]  }
  0x39   :  { %v348_v29 = vld [vmem:[%s621_s6] ss:$0 sm:$0xff]  ;;  %s327_s24 = sshll.u32 %s536_s4, 4  ;;  %s328_s24 = int_to_ptr.vmem [resolvable:$true] %s327_s24 }
  0x3a   :  { %370 = vmatpush3.bf16.msra.mxu0 %v409_v2  ;;  %378 = vmatpush3.bf16.msra.mxu1 %v411_v5  ;;  %s500_s25 = scalar_lea.vmem %s328_s24, 128  ;;  %p505_p7 = scmp.lt.s32.totalorder %s328_s24, %s328_s24 }
  0x3b   :  { %387 = vmatprep.subr.bf16.mxu0 %v534_v0  ;;  %379 = vmatprep.subr.bf16.mxu1 %v534_v0  ;;  %p501_p6 = scmp.ne.s32.totalorder %s328_s24, %s500_s25  ;;  %p506_p8 = scmp.lt.s32.totalorder %s500_s25, %s500_s25 }
  0x3d   :  { %372 = vmatmul.mubr.msk.bf16.vlgmr.msra.gmra.mxu0 %vm106_vm1, %v87_v6  ;;  %p507_p9 = por %p506_p8, %p505_p7 }
  0x3e   :  { %395 = vmatprep.mubr.msk.bf16.mxu0 %vm535_vm0, %v534_v0  ;;  %380 = vmatpush3.bf16.msra.mxu1 %v412_v7 }
  0x3f   :  { %381 = vmatprep.subr.bf16.mxu1 %v534_v0  ;;  %388 = vmatpush3.bf16.msra.mxu0 %v414_v9  ;;  %p508_p10 = pnand %p507_p9, %p501_p6 }
  0x40   :  { %389 = vmatprep.subr.bf16.mxu0 %v534_v0 }
  0x42   :  { %382 = vmatpush3.bf16.msra.mxu1 %v413_v8 }
  0x43   :  { %390 = vmatpush3.bf16.msra.mxu0 %v415_v10 }
  0x44   :  { %391 = vmatprep.subr.bf16.mxu0 %v534_v0 }
  0x47   :  { %392 = vmatpush3.bf16.msra.mxu0 %v416_v19 }
  0x48   :  { %393 = vmatprep.subr.bf16.mxu0 %v534_v0 }
  0x4b   :  { %394 = vmatpush3.bf16.msra.mxu0 %v417_v20 }
  0xfd   :  { %v144_v12 = vpop.f32.mrf.mxu0 }
  0xfe   :  { %v145_v13 = vadd.f32 %v338_v11, %v144_v12 }
  0xff   :  { %v373_v14 = vpop.f32.mrf.mxu0 }
 0x100   :  { %v150_v15 = vmax.f32 %v145_v13, 0.0 }
 0x101   :  { %v147_v16 = vpop.f32.mrf.mxu0 }
 0x102   :  { %v160_v17 = vpack.c.bf16 %v150_v15, %v150_v15 }
 0x103   :  { %v374_v18 = vpop.f32.mrf.mxu0 }
 0x104   :  { %384 = vmatmul.mubr.msk.bf16.vlgmr.msra.gmra.mxu1 %vm191_vm2, %v160_v17 }
 0x1c4   :  { %v229_v22 = vpop.f32.mrf.mxu1 }
 0x1c5   :  { %v230_v23 = vadd.f32 %v342_v21, %v229_v22 }
 0x1c6   :  { %v385_v24 = vpop.f32.mrf.mxu1 }
 0x1c7   :  { %v235_v25 = vmax.f32 %v230_v23, 0.0 }
 0x1c8   :  { %v232_v26 = vpop.f32.mrf.mxu1 }
 0x1c9   :  { %v245_v27 = vpack.c.bf16 %v235_v25, %v235_v25 }
 0x1ca   :  { %v386_v28 = vpop.f32.mrf.mxu1 }
 0x1cb   :  { %396 = vmatmul.mubr.msk.bf16.vlgmr.msra.gmra.mxu0 %vm191_vm2, %v245_v27 }
 0x28b   :  { %v313_v30 = vpop.f32.mrf.mxu0 }
 0x28c   :  { %v314_v31 = vadd.f32 %v348_v29, %v313_v30 }
 0x28d   :  { %v397_v32 = vpop.f32.mrf.mxu0 }
 0x28e   :  { %418 = vtanh.f32 %v314_v31 }
 0x28f   :  { %v316_v33 = vpop.f32.mrf.mxu0 }
 0x291   :  { %v398_v34 = vpop.f32.mrf.mxu0 }
 0x29b   :  { %v419_v35 = vpop.eup %418 }
 0x29c   :  { %320 = vst [vmem:[#allocation10] sm:$0xff] %v419_v35 }
 0x29d   :  { %511 = shalt.err (!%p508_p10)
}
 0x29e   :  { %330 = dma.vmem_to_hbm [thread:$0]  %s328_s24, 128, %s622_s7, [#allocation4]  }
 0x29f   :  { %526 = dma.done.wait [#allocation4], 128  }
 0x2a0   :  { %527 = vsyncadd [#allocation4], 4294967168 }
 0x2a1   :  { %334 = vsyncpa [#allocation3], 1 }
 0x2a2   :  { %335 = vsyncpa [#allocation6], 1 }
 0x2a3   :  { %336 = vsyncpa [#allocation9], 1 }
 0x2a4   :  { %337 = vsyncpa [#allocation4], 1 }

</bundles_post_ra>
